<compile_context>
chip_gen: v7x
topology: tpu7x:2x2x1
jax: 0.10.0
libtpu: 0.0.40
codegen_flags: <defaults>
</compile_context>

<pallas_src>
import math

import jax
import jax.numpy as jnp
from jax.experimental import pallas as pl
from jax.experimental.pallas import tpu as pltpu

IN_FEATURES = 256
OUT_FEATURES = 3
DEFAULT_TILE_B = 2048  # rows per grid step; multiple of 8 (f32 sublanes), 2 MiB/tile


def _linear_kernel(x_ref, w_ref, b_ref, o_ref):
    # x_ref: (TILE_B, 256)  w_ref: (256, 3)  b_ref: (1, 3)  o_ref: (TILE_B, 3)
    acc = jnp.dot(x_ref[...], w_ref[...], preferred_element_type=jnp.float32)
    o_ref[...] = (acc + b_ref[...]).astype(o_ref.dtype)


def classifier_forward(x, weight_t, bias, *, tile_b=DEFAULT_TILE_B):
    """Pallas equivalent of `self.classify(x)` = Linear(256, 3).

    x: (..., 256) f32
    weight_t: (256, 3) f32   (PyTorch weight (3, 256) transposed)
    bias: (3,) f32
    returns: (..., 3) f32
    """
    lead_shape = x.shape[:-1]
    x2d = x.reshape(-1, IN_FEATURES)
    B = x2d.shape[0]
    bias2d = bias.reshape(1, OUT_FEATURES).astype(jnp.float32)

    # Effective tile: multiple of 8 (f32 sublane rule), no larger than needed.
    if B >= tile_b:
        tb = tile_b
    else:
        tb = max(8, -(-B // 8) * 8)

    num_tiles = pl.cdiv(B, tb)
    b_pad = num_tiles * tb
    if b_pad != B:
        # Pad the batch so every grid step sees a full, aligned tile.
        x2d = jnp.pad(x2d, ((0, b_pad - B), (0, 0)))

    cost = pl.CostEstimate(
        flops=2 * b_pad * IN_FEATURES * OUT_FEATURES,
        transcendentals=0,
        bytes_accessed=(
            b_pad * IN_FEATURES * 4            # x read (dominant)
            + IN_FEATURES * OUT_FEATURES * 4   # weight read
            + OUT_FEATURES * 4                 # bias read
            + b_pad * OUT_FEATURES * 4         # output write
        ),
    )

    out = pl.pallas_call(
        _linear_kernel,
        out_shape=jax.ShapeDtypeStruct((b_pad, OUT_FEATURES), jnp.float32),
        grid_spec=pltpu.PrefetchScalarGridSpec(
            num_scalar_prefetch=0,
            grid=(num_tiles,),
            in_specs=[
                # x: one batch tile per grid step (auto double-buffered HBM->VMEM).
                pl.BlockSpec((tb, IN_FEATURES), lambda i: (i, 0)),
                # weight / bias: constant block index -> stay resident in VMEM.
                pl.BlockSpec((IN_FEATURES, OUT_FEATURES), lambda i: (0, 0)),
                pl.BlockSpec((1, OUT_FEATURES), lambda i: (0, 0)),
            ],
            out_specs=pl.BlockSpec((tb, OUT_FEATURES), lambda i: (i, 0)),
        ),
        compiler_params=pltpu.CompilerParams(
            dimension_semantics=("parallel",),
        ),
        cost_estimate=cost,
    )(x2d, weight_t, bias2d)

    if b_pad != B:
        out = out[:B]
    return out.reshape(*lead_shape, OUT_FEATURES)


def init_params(key):
    """Deterministic param init mirroring the PyTorch module:
    kaiming_uniform_ on weight (fan_in=256, gain=sqrt(2)), bias zeros."""
    bound = math.sqrt(2.0) * math.sqrt(3.0 / IN_FEATURES)  # kaiming_uniform bound
    # PyTorch weight shape is (out, in) = (3, 256); store its transpose.
    w = jax.random.uniform(
        key, (OUT_FEATURES, IN_FEATURES), jnp.float32, minval=-bound, maxval=bound
    )
    weight_t = jnp.transpose(w)          # (256, 3)
    bias = jnp.zeros((OUT_FEATURES,), jnp.float32)
    return weight_t, bias


if __name__ == "__main__":
    key = jax.random.PRNGKey(0)
    k_w, k_x, k_x2, k_x3 = jax.random.split(key, 4)

    weight_t, bias = init_params(k_w)

    # Small primary check (B = 8).
    B = 8
    x = jax.random.normal(k_x, (B, IN_FEATURES), jnp.float32)
    out = jax.block_until_ready(classifier_forward(x, weight_t, bias))
    ref = x @ weight_t + bias[None, :]
    assert out.shape == (B, OUT_FEATURES)
    assert jnp.allclose(out, ref, atol=1e-5, rtol=1e-5)

    # Ragged-batch check (exercises the pad-and-slice path, small tile).
    B2 = 13
    x2 = jax.random.normal(k_x2, (B2, IN_FEATURES), jnp.float32)
    out2 = jax.block_until_ready(classifier_forward(x2, weight_t, bias, tile_b=8))
    ref2 = x2 @ weight_t + bias[None, :]
    assert out2.shape == (B2, OUT_FEATURES)
    assert jnp.allclose(out2, ref2, atol=1e-5, rtol=1e-5)

    # Leading-dims check (Linear applies over the last axis).
    x3 = jax.random.normal(k_x3, (2, 5, IN_FEATURES), jnp.float32)
    out3 = jax.block_until_ready(classifier_forward(x3, weight_t, bias))
    ref3 = x3 @ weight_t + bias[None, None, :]
    assert out3.shape == (2, 5, OUT_FEATURES)
    assert jnp.allclose(out3, ref3, atol=1e-5, rtol=1e-5)

    print("KERNEL_OK")
</pallas_src>

<mosaic_0001>
module attributes {stable_mosaic.version = 11 : i64} {
  func.func @_linear_kernel(%arg0: i32, %arg1: memref<8x256xf32, #tpu.memory_space<vmem>>, %arg2: memref<256x3xf32, #tpu.memory_space<vmem>>, %arg3: memref<1x3xf32, #tpu.memory_space<vmem>>, %arg4: memref<8x3xf32, #tpu.memory_space<vmem>>) attributes {dimension_semantics = [#tpu.dimension_semantics<parallel>], iteration_bounds = array<i64: 1>, scalar_prefetch = 0 : i64, scratch_operands = 0 : i64, tpu.core_type = #tpu.core_type<tc>, window_params = [{transform_indices = @transform_0, window_bounds = array<i64: 8, 256>}, {pipeline_mode = #tpu.pipeline_mode<synchronous>, transform_indices = @transform_1, window_bounds = array<i64: 256, 3>}, {pipeline_mode = #tpu.pipeline_mode<synchronous>, transform_indices = @transform_2, window_bounds = array<i64: 1, 3>}, {transform_indices = @transform_3, window_bounds = array<i64: 8, 3>}]} {
    %c0 = arith.constant 0 : index
    %c0_0 = arith.constant 0 : index
    %0 = vector.load %arg1[%c0, %c0_0] : memref<8x256xf32, #tpu.memory_space<vmem>>, vector<8x256xf32>
    %c0_1 = arith.constant 0 : index
    %c0_2 = arith.constant 0 : index
    %1 = vector.load %arg2[%c0_1, %c0_2] : memref<256x3xf32, #tpu.memory_space<vmem>>, vector<256x3xf32>
    %cst = arith.constant dense<0.000000e+00> : vector<8x3xf32>
    %2 = tpu.matmul %0, %1, %cst {dimension_numbers = #tpu.dot_dimension_numbers<[1], [0], [0], [1], [0, 0, 1, 1], [], []>} : vector<8x256xf32>, vector<256x3xf32>, vector<8x3xf32> -> vector<8x3xf32>
    %c0_3 = arith.constant 0 : index
    %c0_4 = arith.constant 0 : index
    %3 = vector.load %arg3[%c0_3, %c0_4] : memref<1x3xf32, #tpu.memory_space<vmem>>, vector<1x3xf32>
    %4 = vector.broadcast %3 : vector<1x3xf32> to vector<8x3xf32>
    %5 = arith.addf %2, %4 : vector<8x3xf32>
    %c0_5 = arith.constant 0 : index
    %c0_6 = arith.constant 0 : index
    %6 = vector.load %arg4[%c0_5, %c0_6] : memref<8x3xf32, #tpu.memory_space<vmem>>, vector<8x3xf32>
    tpu.vector_store %arg4[%c0_5, %c0_6], %5 {strides = array<i32>} : memref<8x3xf32, #tpu.memory_space<vmem>>, vector<8x3xf32>,
    return
  }
  func.func @transform_0(%arg0: i32) -> (i32, i32) {
    %c0_i32 = arith.constant 0 : i32
    %c0_i32_0 = arith.constant 0 : i32
    return %arg0, %c0_i32 : i32, i32
  }
  func.func @transform_1(%arg0: i32) -> (i32, i32) {
    %c0_i32 = arith.constant 0 : i32
    %c0_i32_0 = arith.constant 0 : i32
    %c0_i32_1 = arith.constant 0 : i32
    return %c0_i32, %c0_i32_0 : i32, i32
  }
  func.func @transform_2(%arg0: i32) -> (i32, i32) {
    %c0_i32 = arith.constant 0 : i32
    %c0_i32_0 = arith.constant 0 : i32
    %c0_i32_1 = arith.constant 0 : i32
    return %c0_i32, %c0_i32_0 : i32, i32
  }
  func.func @transform_3(%arg0: i32) -> (i32, i32) {
    %c0_i32 = arith.constant 0 : i32
    %c0_i32_0 = arith.constant 0 : i32
    return %arg0, %c0_i32 : i32, i32
  }
}

</mosaic_0001>

<bundles_post_ra>
// kernel: tpu_custom_call.1
= control target key start
LH: loop header
LB: loop body
LE: loop exit
PB: predicated region body
PF: predicated region fallthrough
CT: control target
= control target key end

     0   :  { %vm125_vm0 = vcmask 23552   ;;  %s327_s1 = inlined_call_operand.vmem [shape: f32[256,3], index: 1, kind: input, shape index: {}]   ;;  %s328_s0 = inlined_call_operand.vmem [shape: f32[8,256], index: 0, kind: input, shape index: {}]   ;;  %s329_s2 = inlined_call_operand.vmem [shape: f32[1,3], index: 2, kind: input, shape index: {}]   ;;  %s330_s3 = inlined_call_operand.vmem [shape: f32[8,3], index: 3, kind: output, shape index: {}]  }
   0x1   :  { %v32_v0 = vld [vmem:[%s327_s1 + $0x80] sm:$0xff]  ;;  %v33_v1 = vld [vmem:[%s327_s1 + $0x88] sm:$0xff]  ;;  %v34_v5 = vld [vmem:[%s327_s1 + $0x90] sm:$0xff] }
   0x2   :  { %v16_v2 = vld [vmem:[%s327_s1] sm:$0xff]  ;;  %v167_v3 = vpack.c.bf16 %v33_v1, %v32_v0  ;;  %v17_v4 = vld [vmem:[%s327_s1 + $0x8] sm:$0xff]  ;;  %v35_v6 = vld [vmem:[%s327_s1 + $0x98] sm:$0xff] }
   0x3   :  { %v169_v7 = vpack.c.bf16 %v17_v4, %v16_v2  ;;  %v171_v8 = vpack.c.bf16 %v35_v6, %v34_v5  ;;  %v18_v9 = vld [vmem:[%s327_s1 + $0x10] sm:$0xff]  ;;  %v19_v10 = vld [vmem:[%s327_s1 + $0x18] sm:$0xff]  ;;  %v36_v11 = vld [vmem:[%s327_s1 + $0xa0] sm:$0xff] }
   0x4   :  { %168 = vmatprep.subr.bf16.mxu0 %v167_v3  ;;  %v37_v12 = vld [vmem:[%s327_s1 + $0xa8] sm:$0xff]  ;;  %v173_v13 = vpack.c.bf16 %v19_v10, %v18_v9  ;;  %v20_v15 = vld [vmem:[%s327_s1 + $0x20] sm:$0xff]  ;;  %v38_v17 = vld [vmem:[%s327_s1 + $0xb0] sm:$0xff] }
   0x5   :  { %170 = vmatpush3.bf16.msra.mxu0 %v169_v7  ;;  %v175_v14 = vpack.c.bf16 %v37_v12, %v36_v11  ;;  %v21_v16 = vld [vmem:[%s327_s1 + $0x28] sm:$0xff]  ;;  %v39_v18 = vld [vmem:[%s327_s1 + $0xb8] sm:$0xff]  ;;  %v22_v21 = vld [vmem:[%s327_s1 + $0x30] sm:$0xff] }
   0x6   :  { %172 = vmatprep.subr.bf16.mxu0 %v171_v8  ;;  %v177_v19 = vpack.c.bf16 %v21_v16, %v20_v15  ;;  %v179_v20 = vpack.c.bf16 %v39_v18, %v38_v17  ;;  %v23_v22 = vld [vmem:[%s327_s1 + $0x38] sm:$0xff]  ;;  %v40_v23 = vld [vmem:[%s327_s1 + $0xc0] sm:$0xff]  ;;  %v41_v24 = vld [vmem:[%s327_s1 + $0xc8] sm:$0xff] }
   0x7   :  { %v15_v25 = vld [vmem:[%s328_s0 + $0x8] sm:$0xff]  ;;  %v181_v26 = vpack.c.bf16 %v23_v22, %v22_v21  ;;  %v183_v27 = vpack.c.bf16 %v41_v24, %v40_v23  ;;  %v24_v28 = vld [vmem:[%s327_s1 + $0x40] sm:$0xff]  ;;  %v42_v30 = vld [vmem:[%s327_s1 + $0xd0] sm:$0xff] }
   0x8   :  { %119 = vmatprep.mubr.f32.mxu0 %v15_v25  ;;  %v25_v29 = vld [vmem:[%s327_s1 + $0x48] sm:$0xff]  ;;  %v43_v31 = vld [vmem:[%s327_s1 + $0xd8] sm:$0xff]  ;;  %v26_v34 = vld [vmem:[%s327_s1 + $0x50] sm:$0xff] }
   0x9   :  { %174 = vmatpush3.bf16.msra.mxu0 %v173_v13  ;;  %v185_v32 = vpack.c.bf16 %v25_v29, %v24_v28  ;;  %v187_v33 = vpack.c.bf16 %v43_v31, %v42_v30  ;;  %v27_v35 = vld [vmem:[%s327_s1 + $0x58] sm:$0xff]  ;;  %v44_v36 = vld [vmem:[%s327_s1 + $0xe0] sm:$0xff]  ;;  %v45_v37 = vld [vmem:[%s327_s1 + $0xe8] sm:$0xff] }
   0xa   :  { %176 = vmatprep.subr.bf16.mxu0 %v175_v14  ;;  %v189_v38 = vpack.c.bf16 %v27_v35, %v26_v34  ;;  %v191_v39 = vpack.c.bf16 %v45_v37, %v44_v36  ;;  %v28_v40 = vld [vmem:[%s327_s1 + $0x60] sm:$0xff]  ;;  %v29_v41 = vld [vmem:[%s327_s1 + $0x68] sm:$0xff]  ;;  %v46_v42 = vld [vmem:[%s327_s1 + $0xf0] sm:$0xff] }
   0xb   :  { %v47_v43 = vld [vmem:[%s327_s1 + $0xf8] sm:$0xff]  ;;  %v193_v44 = vpack.c.bf16 %v29_v41, %v28_v40  ;;  %v30_v46 = vld [vmem:[%s327_s1 + $0x70] sm:$0xff]  ;;  %v14_v49 = vld [vmem:[%s328_s0] sm:$0xff] }
   0xc   :  { %v195_v45 = vpack.c.bf16 %v47_v43, %v46_v42  ;;  %v31_v47 = vld [vmem:[%s327_s1 + $0x78] sm:$0xff]  ;;  %v131_v51 = vld [vmem:[%s329_s2] ss:$0 sm:$0xff] }
   0xd   :  { %178 = vmatpush3.bf16.msra.mxu0 %v177_v19  ;;  %v197_v48 = vpack.c.bf16 %v31_v47, %v30_v46 }
   0xe   :  { %180 = vmatprep.subr.bf16.mxu0 %v179_v20 }
  0x11   :  { %182 = vmatpush3.bf16.msra.mxu0 %v181_v26 }
  0x12   :  { %184 = vmatprep.subr.bf16.mxu0 %v183_v27 }
  0x15   :  { %186 = vmatpush3.bf16.msra.mxu0 %v185_v32 }
  0x16   :  { %188 = vmatprep.subr.bf16.mxu0 %v187_v33 }
  0x19   :  { %190 = vmatpush3.bf16.msra.mxu0 %v189_v38 }
  0x1a   :  { %192 = vmatprep.subr.bf16.mxu0 %v191_v39 }
  0x1d   :  { %194 = vmatpush3.bf16.msra.mxu0 %v193_v44 }
  0x1e   :  { %196 = vmatprep.subr.bf16.mxu0 %v195_v45 }
  0x21   :  { %198 = vmatpush3.bf16.msra.mxu0 %v197_v48 }
  0x24   :  { %120 = vmatmul.mubr.f32.vlgmr.msra.gmra.mrb[0].mxu0 %v14_v49 }
  0xf7   :  { %v164_v50 = vpop.f32.mrb[0].mxu0 }
  0xf8   :  { %v165_v52 = vpop.f32.mrb[1].mxu0 }
  0xf9   :  { %v166_v53 = vadd.f32 %v165_v52, %v164_v50 }
  0xfb   :  { %v122_v54 = vadd.f32 %v166_v53, %v131_v51 }
  0xfd   :  { %126 = vst.msk [vmem:[%s330_s3] sm:$0xff] %vm125_vm0, %v122_v54 }

</bundles_post_ra>
